<compile_context>
chip_gen: v7x
topology: tpu7x:2x2x1
jax: 0.10.0
libtpu: 0.0.40
codegen_flags: <defaults>
</compile_context>

<pallas_src>
import math

import jax
import jax.numpy as jnp
from jax.experimental import pallas as pl
from jax.experimental.pallas import tpu as pltpu

DATA_DIM = 37
DIMS = [DATA_DIM, 32, 16, 8, 4, 2, 4, 8, 16, 32, DATA_DIM]  # 10 Linear layers
N_LAYERS = len(DIMS) - 1  # 10

PAD = 128           # lane-padded feature width (all dims <= 37 < 128)
BIAS_ROWS = 8       # sublane-aligned bias block (row 0 = bias, rest zero)
LAYER_ROWS = PAD + BIAS_ROWS  # 136 rows per layer in the packed slab
SLAB_ROWS = N_LAYERS * LAYER_ROWS


def ae_kernel(x_ref, slab_ref, out_ref):
    """x_ref: (TILE_B, 128); slab_ref: (SLAB_ROWS, 128); out_ref: (2, TILE_B, 128)."""
    h = x_ref[...]  # (TILE_B, 128), lanes >= DATA_DIM are zero

    for i in range(N_LAYERS):
        base = i * LAYER_ROWS
        w = slab_ref[base : base + PAD, :]          # (128, 128), zero-padded
        b = slab_ref[base + PAD : base + PAD + 1, :]  # (1, 128), zero-padded
        h = jnp.tanh(jnp.dot(h, w, preferred_element_type=jnp.float32) + b)
        if i == 4:  # end of encoder
            out_ref[0, :, :] = h  # enc, lane-dense (padding lanes are 0)

    out_ref[1, :, :] = h  # dec, lane-dense (padding lanes are 0)


def make_params(key):
    """PyTorch-style init: U(-1/sqrt(fan_in), 1/sqrt(fan_in)).

    Weights stored as (in, out) (pre-transposed vs torch's (out, in)) so the
    kernel computes h @ W directly; biases stored as (1, out).
    """
    params = []
    for i in range(N_LAYERS):
        fan_in, fan_out = DIMS[i], DIMS[i + 1]
        key, kw, kb = jax.random.split(key, 3)
        bound = 1.0 / math.sqrt(fan_in)
        W = jax.random.uniform(kw, (fan_in, fan_out), jnp.float32, -bound, bound)
        b = jax.random.uniform(kb, (1, fan_out), jnp.float32, -bound, bound)
        params.append(W)
        params.append(b)
    return params


def pack_params(params):
    """One-time packing into a single zero-padded (SLAB_ROWS, 128) f32 slab."""
    blocks = []
    for i in range(N_LAYERS):
        W = params[2 * i]
        b = params[2 * i + 1]
        in_d, out_d = W.shape
        Wp = jnp.zeros((PAD, PAD), jnp.float32).at[:in_d, :out_d].set(W)
        bp = jnp.zeros((BIAS_ROWS, PAD), jnp.float32).at[0, :out_d].set(b[0])
        blocks.append(jnp.concatenate([Wp, bp], axis=0))  # (136, 128)
    return jnp.concatenate(blocks, axis=0)  # (SLAB_ROWS, 128)


def ae_forward(x, slab, *, tile_b=256):
    """Whole AE forward in one pallas_call, tiled over the batch dimension."""
    n = x.shape[0]
    if n < tile_b:
        tile_b = max(8, ((n + 7) // 8) * 8)  # keep (8,128) sublane alignment
    n_pad = ((n + tile_b - 1) // tile_b) * tile_b

    # Lane-dense, batch-padded input (padded rows/lanes are zero -> discarded).
    x_pad = jnp.zeros((n_pad, PAD), jnp.float32).at[:n, :DATA_DIM].set(x)

    out = pl.pallas_call(
        ae_kernel,
        out_shape=jax.ShapeDtypeStruct((2, n_pad, PAD), jnp.float32),
        grid_spec=pltpu.PrefetchScalarGridSpec(
            num_scalar_prefetch=0,
            grid=(n_pad // tile_b,),
            in_specs=[
                pl.BlockSpec((tile_b, PAD), lambda i: (i, 0)),          # x tile
                pl.BlockSpec((SLAB_ROWS, PAD), lambda i: (0, 0)),       # params, VMEM-resident
            ],
            out_specs=pl.BlockSpec((2, tile_b, PAD), lambda i: (0, i, 0)),
        ),
        compiler_params=pltpu.CompilerParams(
            dimension_semantics=("parallel",),  # both TCs on v7x
        ),
    )(x_pad, slab)

    enc = out[0, :n, :2]
    dec = out[1, :n, :DATA_DIM]
    return enc, dec


def ae_reference(x, params):
    """Pure-JAX reference for correctness checking."""
    h = x
    for i in range(5):
        h = jnp.tanh(h @ params[2 * i] + params[2 * i + 1])
    enc = h
    for i in range(5, N_LAYERS):
        h = jnp.tanh(h @ params[2 * i] + params[2 * i + 1])
    return enc, h


if __name__ == "__main__":
    key = jax.random.PRNGKey(0)
    key, kx = jax.random.split(key)

    params = make_params(key)
    slab = pack_params(params)

    # (batch, tile_b): small single-tile case + a multi-step grid / padding case.
    for batch, tile_b in [(8, 256), (300, 128)]:
        x = jax.random.normal(
            jax.random.fold_in(kx, batch), (batch, DATA_DIM), dtype=jnp.float32
        )
        enc, dec = ae_forward(x, slab, tile_b=tile_b)
        enc = jax.block_until_ready(enc)
        dec = jax.block_until_ready(dec)

        enc_ref, dec_ref = ae_reference(x, params)
        assert enc.shape == (batch, 2) and dec.shape == (batch, DATA_DIM)
        assert jnp.allclose(enc, enc_ref, atol=1e-5, rtol=1e-5)
        assert jnp.allclose(dec, dec_ref, atol=1e-5, rtol=1e-5)

    print("KERNEL_OK")
</pallas_src>

<mosaic_0001>
module attributes {stable_mosaic.version = 11 : i64} {
  func.func @ae_kernel(%arg0: i32, %arg1: memref<8x128xf32, #tpu.memory_space<vmem>>, %arg2: memref<1360x128xf32, #tpu.memory_space<vmem>>, %arg3: memref<2x8x128xf32, #tpu.memory_space<vmem>>) attributes {dimension_semantics = [#tpu.dimension_semantics<parallel>], iteration_bounds = array<i64: 1>, scalar_prefetch = 0 : i64, scratch_operands = 0 : i64, tpu.core_type = #tpu.core_type<tc>, window_params = [{transform_indices = @transform_0, window_bounds = array<i64: 8, 128>}, {pipeline_mode = #tpu.pipeline_mode<synchronous>, transform_indices = @transform_1, window_bounds = array<i64: 1360, 128>}, {transform_indices = @transform_2, window_bounds = array<i64: 2, 8, 128>}]} {
    %c0 = arith.constant 0 : index
    %c0_0 = arith.constant 0 : index
    %0 = vector.load %arg1[%c0, %c0_0] : memref<8x128xf32, #tpu.memory_space<vmem>>, vector<8x128xf32>
    %c0_1 = arith.constant 0 : index
    %c0_2 = arith.constant 0 : index
    %1 = vector.load %arg2[%c0_1, %c0_2] : memref<1360x128xf32, #tpu.memory_space<vmem>>, vector<128x128xf32>
    %c128 = arith.constant 128 : index
    %c0_3 = arith.constant 0 : index
    %2 = vector.load %arg2[%c128, %c0_3] : memref<1360x128xf32, #tpu.memory_space<vmem>>, vector<1x128xf32>
    %cst = arith.constant dense<0.000000e+00> : vector<8x128xf32>
    %3 = tpu.matmul %0, %1, %cst {dimension_numbers = #tpu.dot_dimension_numbers<[1], [0], [0], [1], [0, 0, 1, 1], [], []>} : vector<8x128xf32>, vector<128x128xf32>, vector<8x128xf32> -> vector<8x128xf32>
    %4 = vector.broadcast %2 : vector<1x128xf32> to vector<8x128xf32>
    %5 = arith.addf %3, %4 : vector<8x128xf32>
    %6 = math.tanh %5 : vector<8x128xf32>
    %c136 = arith.constant 136 : index
    %c0_4 = arith.constant 0 : index
    %7 = vector.load %arg2[%c136, %c0_4] : memref<1360x128xf32, #tpu.memory_space<vmem>>, vector<128x128xf32>
    %c264 = arith.constant 264 : index
    %c0_5 = arith.constant 0 : index
    %8 = vector.load %arg2[%c264, %c0_5] : memref<1360x128xf32, #tpu.memory_space<vmem>>, vector<1x128xf32>
    %cst_6 = arith.constant dense<0.000000e+00> : vector<8x128xf32>
    %9 = tpu.matmul %6, %7, %cst_6 {dimension_numbers = #tpu.dot_dimension_numbers<[1], [0], [0], [1], [0, 0, 1, 1], [], []>} : vector<8x128xf32>, vector<128x128xf32>, vector<8x128xf32> -> vector<8x128xf32>
    %10 = vector.broadcast %8 : vector<1x128xf32> to vector<8x128xf32>
    %11 = arith.addf %9, %10 : vector<8x128xf32>
    %12 = math.tanh %11 : vector<8x128xf32>
    %c272 = arith.constant 272 : index
    %c0_7 = arith.constant 0 : index
    %13 = vector.load %arg2[%c272, %c0_7] : memref<1360x128xf32, #tpu.memory_space<vmem>>, vector<128x128xf32>
    %c400 = arith.constant 400 : index
    %c0_8 = arith.constant 0 : index
    %14 = vector.load %arg2[%c400, %c0_8] : memref<1360x128xf32, #tpu.memory_space<vmem>>, vector<1x128xf32>
    %cst_9 = arith.constant dense<0.000000e+00> : vector<8x128xf32>
    %15 = tpu.matmul %12, %13, %cst_9 {dimension_numbers = #tpu.dot_dimension_numbers<[1], [0], [0], [1], [0, 0, 1, 1], [], []>} : vector<8x128xf32>, vector<128x128xf32>, vector<8x128xf32> -> vector<8x128xf32>
    %16 = vector.broadcast %14 : vector<1x128xf32> to vector<8x128xf32>
    %17 = arith.addf %15, %16 : vector<8x128xf32>
    %18 = math.tanh %17 : vector<8x128xf32>
    %c408 = arith.constant 408 : index
    %c0_10 = arith.constant 0 : index
    %19 = vector.load %arg2[%c408, %c0_10] : memref<1360x128xf32, #tpu.memory_space<vmem>>, vector<128x128xf32>
    %c536 = arith.constant 536 : index
    %c0_11 = arith.constant 0 : index
    %20 = vector.load %arg2[%c536, %c0_11] : memref<1360x128xf32, #tpu.memory_space<vmem>>, vector<1x128xf32>
    %cst_12 = arith.constant dense<0.000000e+00> : vector<8x128xf32>
    %21 = tpu.matmul %18, %19, %cst_12 {dimension_numbers = #tpu.dot_dimension_numbers<[1], [0], [0], [1], [0, 0, 1, 1], [], []>} : vector<8x128xf32>, vector<128x128xf32>, vector<8x128xf32> -> vector<8x128xf32>
    %22 = vector.broadcast %20 : vector<1x128xf32> to vector<8x128xf32>
    %23 = arith.addf %21, %22 : vector<8x128xf32>
    %24 = math.tanh %23 : vector<8x128xf32>
    %c544 = arith.constant 544 : index
    %c0_13 = arith.constant 0 : index
    %25 = vector.load %arg2[%c544, %c0_13] : memref<1360x128xf32, #tpu.memory_space<vmem>>, vector<128x128xf32>
    %c672 = arith.constant 672 : index
    %c0_14 = arith.constant 0 : index
    %26 = vector.load %arg2[%c672, %c0_14] : memref<1360x128xf32, #tpu.memory_space<vmem>>, vector<1x128xf32>
    %cst_15 = arith.constant dense<0.000000e+00> : vector<8x128xf32>
    %27 = tpu.matmul %24, %25, %cst_15 {dimension_numbers = #tpu.dot_dimension_numbers<[1], [0], [0], [1], [0, 0, 1, 1], [], []>} : vector<8x128xf32>, vector<128x128xf32>, vector<8x128xf32> -> vector<8x128xf32>
    %28 = vector.broadcast %26 : vector<1x128xf32> to vector<8x128xf32>
    %29 = arith.addf %27, %28 : vector<8x128xf32>
    %30 = math.tanh %29 : vector<8x128xf32>
    %c0_16 = arith.constant 0 : index
    %c0_17 = arith.constant 0 : index
    %c0_18 = arith.constant 0 : index
    %31 = vector.load %arg3[%c0_16, %c0_17, %c0_18] : memref<2x8x128xf32, #tpu.memory_space<vmem>>, vector<1x8x128xf32>
    %32 = vector.shape_cast %31 : vector<1x8x128xf32> to vector<8x128xf32>
    %33 = vector.shape_cast %30 : vector<8x128xf32> to vector<1x8x128xf32>
    tpu.vector_store %arg3[%c0_16, %c0_17, %c0_18], %33 {strides = array<i32>} : memref<2x8x128xf32, #tpu.memory_space<vmem>>, vector<1x8x128xf32>,
    %c680 = arith.constant 680 : index
    %c0_19 = arith.constant 0 : index
    %34 = vector.load %arg2[%c680, %c0_19] : memref<1360x128xf32, #tpu.memory_space<vmem>>, vector<128x128xf32>
    %c808 = arith.constant 808 : index
    %c0_20 = arith.constant 0 : index
    %35 = vector.load %arg2[%c808, %c0_20] : memref<1360x128xf32, #tpu.memory_space<vmem>>, vector<1x128xf32>
    %cst_21 = arith.constant dense<0.000000e+00> : vector<8x128xf32>
    %36 = tpu.matmul %30, %34, %cst_21 {dimension_numbers = #tpu.dot_dimension_numbers<[1], [0], [0], [1], [0, 0, 1, 1], [], []>} : vector<8x128xf32>, vector<128x128xf32>, vector<8x128xf32> -> vector<8x128xf32>
    %37 = vector.broadcast %35 : vector<1x128xf32> to vector<8x128xf32>
    %38 = arith.addf %36, %37 : vector<8x128xf32>
    %39 = math.tanh %38 : vector<8x128xf32>
    %c816 = arith.constant 816 : index
    %c0_22 = arith.constant 0 : index
    %40 = vector.load %arg2[%c816, %c0_22] : memref<1360x128xf32, #tpu.memory_space<vmem>>, vector<128x128xf32>
    %c944 = arith.constant 944 : index
    %c0_23 = arith.constant 0 : index
    %41 = vector.load %arg2[%c944, %c0_23] : memref<1360x128xf32, #tpu.memory_space<vmem>>, vector<1x128xf32>
    %cst_24 = arith.constant dense<0.000000e+00> : vector<8x128xf32>
    %42 = tpu.matmul %39, %40, %cst_24 {dimension_numbers = #tpu.dot_dimension_numbers<[1], [0], [0], [1], [0, 0, 1, 1], [], []>} : vector<8x128xf32>, vector<128x128xf32>, vector<8x128xf32> -> vector<8x128xf32>
    %43 = vector.broadcast %41 : vector<1x128xf32> to vector<8x128xf32>
    %44 = arith.addf %42, %43 : vector<8x128xf32>
    %45 = math.tanh %44 : vector<8x128xf32>
    %c952 = arith.constant 952 : index
    %c0_25 = arith.constant 0 : index
    %46 = vector.load %arg2[%c952, %c0_25] : memref<1360x128xf32, #tpu.memory_space<vmem>>, vector<128x128xf32>
    %c1080 = arith.constant 1080 : index
    %c0_26 = arith.constant 0 : index
    %47 = vector.load %arg2[%c1080, %c0_26] : memref<1360x128xf32, #tpu.memory_space<vmem>>, vector<1x128xf32>
    %cst_27 = arith.constant dense<0.000000e+00> : vector<8x128xf32>
    %48 = tpu.matmul %45, %46, %cst_27 {dimension_numbers = #tpu.dot_dimension_numbers<[1], [0], [0], [1], [0, 0, 1, 1], [], []>} : vector<8x128xf32>, vector<128x128xf32>, vector<8x128xf32> -> vector<8x128xf32>
    %49 = vector.broadcast %47 : vector<1x128xf32> to vector<8x128xf32>
    %50 = arith.addf %48, %49 : vector<8x128xf32>
    %51 = math.tanh %50 : vector<8x128xf32>
    %c1088 = arith.constant 1088 : index
    %c0_28 = arith.constant 0 : index
    %52 = vector.load %arg2[%c1088, %c0_28] : memref<1360x128xf32, #tpu.memory_space<vmem>>, vector<128x128xf32>
    %c1216 = arith.constant 1216 : index
    %c0_29 = arith.constant 0 : index
    %53 = vector.load %arg2[%c1216, %c0_29] : memref<1360x128xf32, #tpu.memory_space<vmem>>, vector<1x128xf32>
    %cst_30 = arith.constant dense<0.000000e+00> : vector<8x128xf32>
    %54 = tpu.matmul %51, %52, %cst_30 {dimension_numbers = #tpu.dot_dimension_numbers<[1], [0], [0], [1], [0, 0, 1, 1], [], []>} : vector<8x128xf32>, vector<128x128xf32>, vector<8x128xf32> -> vector<8x128xf32>
    %55 = vector.broadcast %53 : vector<1x128xf32> to vector<8x128xf32>
    %56 = arith.addf %54, %55 : vector<8x128xf32>
    %57 = math.tanh %56 : vector<8x128xf32>
    %c1224 = arith.constant 1224 : index
    %c0_31 = arith.constant 0 : index
    %58 = vector.load %arg2[%c1224, %c0_31] : memref<1360x128xf32, #tpu.memory_space<vmem>>, vector<128x128xf32>
    %c1352 = arith.constant 1352 : index
    %c0_32 = arith.constant 0 : index
    %59 = vector.load %arg2[%c1352, %c0_32] : memref<1360x128xf32, #tpu.memory_space<vmem>>, vector<1x128xf32>
    %cst_33 = arith.constant dense<0.000000e+00> : vector<8x128xf32>
    %60 = tpu.matmul %57, %58, %cst_33 {dimension_numbers = #tpu.dot_dimension_numbers<[1], [0], [0], [1], [0, 0, 1, 1], [], []>} : vector<8x128xf32>, vector<128x128xf32>, vector<8x128xf32> -> vector<8x128xf32>
    %61 = vector.broadcast %59 : vector<1x128xf32> to vector<8x128xf32>
    %62 = arith.addf %60, %61 : vector<8x128xf32>
    %63 = math.tanh %62 : vector<8x128xf32>
    %c1 = arith.constant 1 : index
    %c0_34 = arith.constant 0 : index
    %c0_35 = arith.constant 0 : index
    %64 = vector.load %arg3[%c1, %c0_34, %c0_35] : memref<2x8x128xf32, #tpu.memory_space<vmem>>, vector<1x8x128xf32>
    %65 = vector.shape_cast %64 : vector<1x8x128xf32> to vector<8x128xf32>
    %66 = vector.shape_cast %63 : vector<8x128xf32> to vector<1x8x128xf32>
    tpu.vector_store %arg3[%c1, %c0_34, %c0_35], %66 {strides = array<i32>} : memref<2x8x128xf32, #tpu.memory_space<vmem>>, vector<1x8x128xf32>,
    return
  }
  func.func @transform_0(%arg0: i32) -> (i32, i32) {
    %c0_i32 = arith.constant 0 : i32
    %c0_i32_0 = arith.constant 0 : i32
    return %arg0, %c0_i32 : i32, i32
  }
  func.func @transform_1(%arg0: i32) -> (i32, i32) {
    %c0_i32 = arith.constant 0 : i32
    %c0_i32_0 = arith.constant 0 : i32
    %c0_i32_1 = arith.constant 0 : i32
    return %c0_i32, %c0_i32_0 : i32, i32
  }
  func.func @transform_2(%arg0: i32) -> (i32, i32, i32) {
    %c0_i32 = arith.constant 0 : i32
    %c0_i32_0 = arith.constant 0 : i32
    %c0_i32_1 = arith.constant 0 : i32
    return %c0_i32, %arg0, %c0_i32_0 : i32, i32, i32
  }
}

</mosaic_0001>

<bundles_post_ra>
// kernel: tpu_custom_call.1
= control target key start
LH: loop header
LB: loop body
LE: loop exit
PB: predicated region body
PF: predicated region fallthrough
CT: control target
= control target key end

     0   :  { %7 = vsyncpa [#allocation3], 0  ;;  %s2022_s0 = inlined_call_operand.hbm [shape: f32[8,128], index: 0, kind: input, shape index: {}]   ;;  %s2023_s1 = inlined_call_operand.hbm [shape: f32[1360,128], index: 1, kind: input, shape index: {}]   ;;  %s2024_s2 = inlined_call_operand.hbm [shape: f32[2,8,128], index: 2, kind: output, shape index: {}]  }
   0x1   :  { %8 = vsyncpa [#allocation6], 0 }
   0x2   :  { %9 = vsyncpa [#allocation4], 0  ;;  %s1850_s9 = smov [#allocation2]   ;;  %s1851_s11 = smov [#allocation5]  }
   0x3   :  { %s16_s10 = sshll.u32 %s1850_s9, 4  ;;  %s25_s12 = sshll.u32 %s1851_s11, 4  ;;  %s17_s10 = int_to_ptr.vmem [resolvable:$true] %s16_s10  ;;  %s1873_s12 = int_to_ptr.vmem [resolvable:$true] %s25_s12 }
   0x4   :  { %s1778_s15 = scalar_lea.hbm %s2022_s0, 128 }
   0x5   :  { %p1779_p0 = scmp.ne.s32.totalorder %s2022_s0, %s1778_s15  ;;  %p1782_p1 = scmp.lt.u32.totalorder %s1778_s15, %s2022_s0 }
   0x7   :  { %p1784_p2 = pnand %p1782_p1, %p1779_p0 }
   0x9   :  { %1787 = shalt.err (!%p1784_p2)
}
   0xa   :  { %s1788_s20 = scalar_lea.vmem %s17_s10, 128  ;;  %p1793_p4 = scmp.lt.s32.totalorder %s17_s10, %s17_s10 }
   0xb   :  { %p1789_p3 = scmp.ne.s32.totalorder %s17_s10, %s1788_s20  ;;  %p1794_p5 = scmp.lt.s32.totalorder %s1788_s20, %s1788_s20 }
   0xd   :  { %p1795_p6 = por %p1794_p5, %p1793_p4 }
   0xf   :  { %p1796_p7 = pnand %p1795_p6, %p1789_p3 }
  0x11   :  { %1799 = shalt.err (!%p1796_p7)
}
  0x12   :  { %19 = dma.hbm_to_vmem [thread:$0]  %s2022_s0, 128, %s17_s10, [#allocation3]  }
  0x13   :  { %s1800_s25 = scalar_lea.hbm %s2023_s1, 21760 }
  0x14   :  { %p1801_p8 = scmp.ne.s32.totalorder %s2023_s1, %s1800_s25  ;;  %p1804_p9 = scmp.lt.u32.totalorder %s1800_s25, %s2023_s1 }
  0x16   :  { %p1806_p10 = pnand %p1804_p9, %p1801_p8 }
  0x18   :  { %1809 = shalt.err (!%p1806_p10)
}
  0x19   :  { %s1810_s30 = scalar_lea.vmem %s1873_s12, 21760  ;;  %p1815_p12 = scmp.lt.s32.totalorder %s1873_s12, %s1873_s12 }
  0x1a   :  { %p1811_p11 = scmp.ne.s32.totalorder %s1873_s12, %s1810_s30  ;;  %p1816_p13 = scmp.lt.s32.totalorder %s1810_s30, %s1810_s30 }
  0x1c   :  { %p1817_p0 = por %p1816_p13, %p1815_p12 }
  0x1e   :  { %p1818_p1 = pnand %p1817_p0, %p1811_p11 }
  0x20   :  { %1821 = shalt.err (!%p1818_p1)
}
  0x21   :  { %s1852_s0 = smov 128   ;;  %s1853_s3 = smov 8  }
  0x22   :  { %31 = dma.hbm_to_vmem [thread:$0]  %s2023_s1, 21760, %s1873_s12, [#allocation6], %s1852_s0, %s1852_s0, %s1853_s3  }
  0x23   :  { %1844 = dma.done.wait [#allocation3], 128  }
  0x24   :  { %1845 = vsyncadd [#allocation3], 4294967168 }
  0x25   :  { %1846 = dma.done.wait [#allocation6], 21760  }
  0x26   :  { %1847 = vsyncadd [#allocation6], 4294945536  ;;  %v1854_v0 = vmov 0.0|0.0   ;;  %vm1855_vm0 = vmmov 0   ;;  %v1856_v1 = vmov 0.0   ;;  %v39_v2 = vld [vmem:[#allocation5] sm:$0xff] }
  0x27   :  { %1510 = vmatprep.subr.bf16.mxu0 %v1854_v0  ;;  %1192 = vmatprep.mubr.msk.f32.mxu0 %vm1855_vm0, %v1856_v1  ;;  %v40_v3 = vld [vmem:[#allocation5 + $0x8] sm:$0xff]  ;;  %v41_v4 = vld [vmem:[#allocation5 + $0x10] sm:$0xff]  ;;  %v42_v6 = vld [vmem:[#allocation5 + $0x18] sm:$0xff]  ;;  %s1857_s1 = smov [#allocation7]  }
  0x28   :  { %1534 = vmatprep.subr.bf16.mxu1 %v1854_v0  ;;  %1227 = vmatprep.mubr.msk.f32.mxu1 %vm1855_vm0, %v1856_v1  ;;  %v1511_v5 = vpack.c.bf16 %v40_v3, %v39_v2  ;;  %v1514_v7 = vpack.c.bf16 %v42_v6, %v41_v4  ;;  %v43_v8 = vld [vmem:[#allocation5 + $0x20] sm:$0xff]  ;;  %v44_v9 = vld [vmem:[#allocation5 + $0x28] sm:$0xff]  ;;  %v132_v11 = vld [vmem:[#allocation5 + $0x90] sm:$0xff]  ;;  %s967_s6 = sshll.u32 %s1857_s1, 4  ;;  %s968_s6 = int_to_ptr.vmem [resolvable:$true] %s967_s6 }
  0x29   :  { %v131_v10 = vld [vmem:[#allocation5 + $0x88] sm:$0xff]  ;;  %v133_v12 = vld [vmem:[#allocation5 + $0x98] sm:$0xff]  ;;  %v134_v13 = vld [vmem:[#allocation5 + $0xa0] sm:$0xff]  ;;  %v1517_v14 = vpack.c.bf16 %v44_v9, %v43_v8  ;;  %s1822_s7 = scalar_lea.vmem %s968_s6, 256  ;;  %p1827_p3 = scmp.lt.s32.totalorder %s968_s6, %s968_s6 }
  0x2a   :  { %1512 = vmatpush3.bf16.msra.mxu0 %v1511_v5  ;;  %v1535_v15 = vpack.c.bf16 %v132_v11, %v131_v10  ;;  %v45_v16 = vld [vmem:[#allocation5 + $0x30] sm:$0xff]  ;;  %v46_v17 = vld [vmem:[#allocation5 + $0x38] sm:$0xff]  ;;  %v1538_v18 = vpack.c.bf16 %v134_v13, %v133_v12  ;;  %v135_v19 = vld [vmem:[#allocation5 + $0xa8] sm:$0xff]  ;;  %p1823_p2 = scmp.ne.s32.totalorder %s968_s6, %s1822_s7  ;;  %p1828_p4 = scmp.lt.s32.totalorder %s1822_s7, %s1822_s7 }
  0x2b   :  { %1513 = vmatprep.subr.bf16.mxu0 %v1854_v0  ;;  %v136_v20 = vld [vmem:[#allocation5 + $0xb0] sm:$0xff]  ;;  %v1520_v21 = vpack.c.bf16 %v46_v17, %v45_v16  ;;  %v47_v22 = vld [vmem:[#allocation5 + $0x40] sm:$0xff]  ;;  %v48_v23 = vld [vmem:[#allocation5 + $0x48] sm:$0xff] }
  0x2c   :  { %1536 = vmatpush3.bf16.msra.mxu1 %v1535_v15  ;;  %v1541_v24 = vpack.c.bf16 %v136_v20, %v135_v19  ;;  %v137_v25 = vld [vmem:[#allocation5 + $0xb8] sm:$0xff]  ;;  %v138_v26 = vld [vmem:[#allocation5 + $0xc0] sm:$0xff]  ;;  %v1523_v27 = vpack.c.bf16 %v48_v23, %v47_v22  ;;  %v49_v28 = vld [vmem:[#allocation5 + $0x50] sm:$0xff]  ;;  %p1829_p5 = por %p1828_p4, %p1827_p3 }
  0x2d   :  { %1537 = vmatprep.subr.bf16.mxu1 %v1854_v0  ;;  %v50_v29 = vld [vmem:[#allocation5 + $0x58] sm:$0xff]  ;;  %v1544_v30 = vpack.c.bf16 %v138_v26, %v137_v25  ;;  %v139_v31 = vld [vmem:[#allocation5 + $0xc8] sm:$0xff]  ;;  %v140_v32 = vld [vmem:[#allocation5 + $0xd0] sm:$0xff] }
  0x2e   :  { %1515 = vmatpush3.bf16.msra.mxu0 %v1514_v7  ;;  %v1526_v33 = vpack.c.bf16 %v50_v29, %v49_v28  ;;  %v51_v34 = vld [vmem:[#allocation5 + $0x60] sm:$0xff]  ;;  %v52_v35 = vld [vmem:[#allocation5 + $0x68] sm:$0xff]  ;;  %v1547_v36 = vpack.c.bf16 %v140_v32, %v139_v31  ;;  %v53_v38 = vld [vmem:[#allocation5 + $0x70] sm:$0xff]  ;;  %p1830_p6 = pnand %p1829_p5, %p1823_p2 }
  0x2f   :  { %1516 = vmatprep.subr.bf16.mxu0 %v1854_v0  ;;  %v1529_v37 = vpack.c.bf16 %v52_v35, %v51_v34  ;;  %v54_v39 = vld [vmem:[#allocation5 + $0x78] sm:$0xff]  ;;  %v142_v43 = vld [vmem:[#allocation5 + $0xe0] sm:$0xff]  ;;  %v143_v45 = vld [vmem:[#allocation5 + $0xe8] sm:$0xff] }
  0x30   :  { %1539 = vmatpush3.bf16.msra.mxu1 %v1538_v18  ;;  %v1532_v40 = vpack.c.bf16 %v54_v39, %v53_v38  ;;  %v38_v41 = vld [vmem:[#allocation2] sm:$0xff]  ;;  %v144_v46 = vld [vmem:[#allocation5 + $0xf0] sm:$0xff]  ;;  %v146_v49 = vld [vmem:[#allocation5 + $0x100] sm:$0xff] }
  0x31   :  { %1540 = vmatprep.subr.bf16.mxu1 %v1854_v0  ;;  %v141_v42 = vld [vmem:[#allocation5 + $0xd8] sm:$0xff]  ;;  %v1553_v47 = vpack.c.bf16 %v144_v46, %v143_v45  ;;  %v223_v51 = vld [vmem:[#allocation5 + $0x110] sm:$0xff]  ;;  %v225_v53 = vld [vmem:[#allocation5 + $0x120] sm:$0xff] }
  0x32   :  { %1518 = vmatpush3.bf16.msra.mxu0 %v1517_v14  ;;  %v1550_v44 = vpack.c.bf16 %v142_v43, %v141_v42  ;;  %v145_v48 = vld [vmem:[#allocation5 + $0xf8] sm:$0xff]  ;;  %v226_v55 = vld [vmem:[#allocation5 + $0x128] sm:$0xff]  ;;  %v227_v57 = vld [vmem:[#allocation5 + $0x130] sm:$0xff] }
  0x33   :  { %1519 = vmatprep.subr.bf16.mxu0 %v1854_v0  ;;  %v1556_v50 = vpack.c.bf16 %v146_v49, %v145_v48  ;;  %v224_v52 = vld [vmem:[#allocation5 + $0x118] sm:$0xff]  ;;  %v1562_v56 = vpack.c.bf16 %v226_v55, %v225_v53  ;;  %v229_v60 = vld [vmem:[#allocation5 + $0x140] sm:$0xff]  ;;  %v230_v61 = vld [vmem:[#allocation5 + $0x148] sm:$0xff] }
  0x34   :  { %1542 = vmatpush3.bf16.msra.mxu1 %v1541_v24  ;;  %v1559_v54 = vpack.c.bf16 %v224_v52, %v223_v51  ;;  %v228_v58 = vld [vmem:[#allocation5 + $0x138] sm:$0xff]  ;;  %v1568_v62 = vpack.c.bf16 %v230_v61, %v229_v60  ;;  %v231_v63 = vld [vmem:[#allocation5 + $0x150] sm:$0xff]  ;;  %v980_v4 = vld [vmem:[#allocation5 + $0x80] ss:$0 sm:$0xff] }
  0x35   :  { %1543 = vmatprep.subr.bf16.mxu1 %v1854_v0  ;;  %v1565_v59 = vpack.c.bf16 %v228_v58, %v227_v57  ;;  %v232_v2 = vld [vmem:[#allocation5 + $0x158] sm:$0xff]  ;;  %v233_v9 = vld [vmem:[#allocation5 + $0x160] sm:$0xff]  ;;  %v234_v10 = vld [vmem:[#allocation5 + $0x168] sm:$0xff] }
  0x36   :  { %1521 = vmatpush3.bf16.msra.mxu0 %v1520_v21  ;;  %v1571_v3 = vpack.c.bf16 %v232_v2, %v231_v63  ;;  %v1574_v11 = vpack.c.bf16 %v234_v10, %v233_v9  ;;  %v235_v12 = vld [vmem:[#allocation5 + $0x170] sm:$0xff]  ;;  %v236_v13 = vld [vmem:[#allocation5 + $0x178] sm:$0xff]  ;;  %v237_v15 = vld [vmem:[#allocation5 + $0x180] sm:$0xff] }
  0x37   :  { %1522 = vmatprep.subr.bf16.mxu0 %v1854_v0  ;;  %v1577_v14 = vpack.c.bf16 %v236_v13, %v235_v12  ;;  %v238_v16 = vld [vmem:[#allocation5 + $0x188] sm:$0xff]  ;;  %v315_v18 = vld [vmem:[#allocation5 + $0x198] sm:$0xff]  ;;  %v316_v19 = vld [vmem:[#allocation5 + $0x1a0] sm:$0xff] }
  0x38   :  { %1545 = vmatpush3.bf16.msra.mxu1 %v1544_v30  ;;  %v1580_v17 = vpack.c.bf16 %v238_v16, %v237_v15  ;;  %v317_v20 = vld [vmem:[#allocation5 + $0x1a8] sm:$0xff]  ;;  %v1583_v21 = vpack.c.bf16 %v316_v19, %v315_v18  ;;  %v318_v22 = vld [vmem:[#allocation5 + $0x1b0] sm:$0xff]  ;;  %v319_v24 = vld [vmem:[#allocation5 + $0x1b8] sm:$0xff] }
  0x39   :  { %1546 = vmatprep.subr.bf16.mxu1 %v1854_v0  ;;  %v1586_v23 = vpack.c.bf16 %v318_v22, %v317_v20  ;;  %v320_v25 = vld [vmem:[#allocation5 + $0x1c0] sm:$0xff]  ;;  %v322_v28 = vld [vmem:[#allocation5 + $0x1d0] sm:$0xff]  ;;  %v323_v30 = vld [vmem:[#allocation5 + $0x1d8] sm:$0xff] }
  0x3a   :  { %1524 = vmatpush3.bf16.msra.mxu0 %v1523_v27  ;;  %v1589_v26 = vpack.c.bf16 %v320_v25, %v319_v24  ;;  %v321_v27 = vld [vmem:[#allocation5 + $0x1c8] sm:$0xff]  ;;  %v324_v31 = vld [vmem:[#allocation5 + $0x1e0] sm:$0xff]  ;;  %v326_v39 = vld [vmem:[#allocation5 + $0x1f0] sm:$0xff] }
  0x3b   :  { %1525 = vmatprep.subr.bf16.mxu0 %v1854_v0  ;;  %v1592_v29 = vpack.c.bf16 %v322_v28, %v321_v27  ;;  %v1595_v32 = vpack.c.bf16 %v324_v31, %v323_v30  ;;  %v325_v38 = vld [vmem:[#allocation5 + $0x1e8] sm:$0xff]  ;;  %v328_v42 = vld [vmem:[#allocation5 + $0x200] sm:$0xff]  ;;  %v330_v45 = vld [vmem:[#allocation5 + $0x210] sm:$0xff] }
  0x3c   :  { %1548 = vmatpush3.bf16.msra.mxu1 %v1547_v36  ;;  %v408_v48 = vld [vmem:[#allocation5 + $0x228] sm:$0xff]  ;;  %v409_v49 = vld [vmem:[#allocation5 + $0x230] sm:$0xff]  ;;  %v410_v51 = vld [vmem:[#allocation5 + $0x238] sm:$0xff] }
  0x3d   :  { %1549 = vmatprep.subr.bf16.mxu1 %v1854_v0  ;;  %v1610_v52 = vpack.c.bf16 %v410_v51, %v409_v49  ;;  %v411_v53 = vld [vmem:[#allocation5 + $0x240] sm:$0xff]  ;;  %v414_v57 = vld [vmem:[#allocation5 + $0x258] sm:$0xff]  ;;  %v416_v60 = vld [vmem:[#allocation5 + $0x268] sm:$0xff] }
  0x3e   :  { %1527 = vmatpush3.bf16.msra.mxu0 %v1526_v33  ;;  %v981_v33 = vld [vmem:[#allocation5 + $0x108] ss:$0 sm:$0xff]  ;;  %v422_v12 = vld [vmem:[#allocation5 + $0x298] sm:$0xff]  ;;  %v501_v15 = vld [vmem:[#allocation5 + $0x2b0] sm:$0xff] }
  0x3f   :  { %1528 = vmatprep.subr.bf16.mxu0 %v1854_v0  ;;  %v420_v9 = vld [vmem:[#allocation5 + $0x288] sm:$0xff]  ;;  %v502_v16 = vld [vmem:[#allocation5 + $0x2b8] sm:$0xff]  ;;  %v503_v18 = vld [vmem:[#allocation5 + $0x2c0] sm:$0xff] }
  0x40   :  { %1551 = vmatpush3.bf16.msra.mxu1 %v1550_v44  ;;  %v329_v44 = vld [vmem:[#allocation5 + $0x208] sm:$0xff]  ;;  %v1634_v19 = vpack.c.bf16 %v503_v18, %v502_v16  ;;  %v507_v24 = vld [vmem:[#allocation5 + $0x2e0] sm:$0xff]  ;;  %v509_v27 = vld [vmem:[#allocation5 + $0x2f0] sm:$0xff] }
  0x41   :  { %1552 = vmatprep.subr.bf16.mxu1 %v1854_v0  ;;  %v1604_v46 = vpack.c.bf16 %v330_v45, %v329_v44  ;;  %v504_v20 = vld [vmem:[#allocation5 + $0x2c8] sm:$0xff]  ;;  %v593_v44 = vld [vmem:[#allocation5 + $0x338] sm:$0xff]  ;;  %v594_v45 = vld [vmem:[#allocation5 + $0x340] sm:$0xff] }
  0x42   :  { %1530 = vmatpush3.bf16.msra.mxu0 %v1529_v37  ;;  %v596_v49 = vld [vmem:[#allocation5 + $0x350] sm:$0xff]  ;;  %v688_v16 = vld [vmem:[#allocation5 + $0x3d8] sm:$0xff] }
  0x43   :  { %1531 = vmatprep.subr.bf16.mxu0 %v1854_v0 }
  0x44   :  { %1554 = vmatpush3.bf16.msra.mxu1 %v1553_v47  ;;  %v407_v47 = vld [vmem:[#allocation5 + $0x220] sm:$0xff] }
  0x45   :  { %1555 = vmatprep.subr.bf16.mxu1 %v1854_v0 }
  0x46   :  { %1533 = vmatpush3.bf16.msra.mxu0 %v1532_v40  ;;  %v1598_v40 = vpack.c.bf16 %v326_v39, %v325_v38  ;;  %v513_v38 = vld [vmem:[#allocation5 + $0x310] sm:$0xff] }
  0x47   :  { %1558 = vmatprep.subr.bf16.mxu0 %v1854_v0 }
  0x48   :  { %1557 = vmatpush3.bf16.msra.mxu1 %v1556_v50  ;;  %v1607_v50 = vpack.c.bf16 %v408_v48, %v407_v47  ;;  %v595_v47 = vld [vmem:[#allocation5 + $0x348] sm:$0xff] }
  0x49   :  { %1193 = vmatmul.mubr.f32.vlgmr.msra.gmra.mrb[0].mxu0 %v38_v41  ;;  %1582 = vmatprep.subr.bf16.mxu1 %v1854_v0  ;;  %v327_v41 = vld [vmem:[#allocation5 + $0x1f8] sm:$0xff]  ;;  %v1658_v48 = vpack.c.bf16 %v595_v47, %v594_v45  ;;  %v780_v45 = vld [vmem:[#allocation5 + $0x460] sm:$0xff] }
  0x4a   :  { %1262 = vmatprep.mubr.msk.f32.mxu0 %vm1855_vm0, %v1856_v1  ;;  %1560 = vmatpush3.bf16.msra.mxu0 %v1559_v54  ;;  %v1601_v43 = vpack.c.bf16 %v328_v42, %v327_v41  ;;  %v412_v54 = vld [vmem:[#allocation5 + $0x248] sm:$0xff]  ;;  %v515_v41 = vld [vmem:[#allocation5 + $0x320] sm:$0xff] }
  0x4b   :  { %1561 = vmatprep.subr.bf16.mxu0 %v1854_v0  ;;  %v1613_v55 = vpack.c.bf16 %v412_v54, %v411_v53  ;;  %v599_v53 = vld [vmem:[#allocation5 + $0x368] sm:$0xff] }
  0x4e   :  { %1563 = vmatpush3.bf16.msra.mxu0 %v1562_v56  ;;  %v413_v56 = vld [vmem:[#allocation5 + $0x250] sm:$0xff] }
  0x4f   :  { %1564 = vmatprep.subr.bf16.mxu0 %v1854_v0  ;;  %v1616_v58 = vpack.c.bf16 %v414_v57, %v413_v56  ;;  %v601_v56 = vld [vmem:[#allocation5 + $0x378] sm:$0xff] }
  0x52   :  { %1566 = vmatpush3.bf16.msra.mxu0 %v1565_v59  ;;  %v415_v59 = vld [vmem:[#allocation5 + $0x260] sm:$0xff] }
  0x53   :  { %1567 = vmatprep.subr.bf16.mxu0 %v1854_v0  ;;  %v1619_v61 = vpack.c.bf16 %v416_v60, %v415_v59 }
  0x56   :  { %1569 = vmatpush3.bf16.msra.mxu0 %v1568_v62  ;;  %v982_v62 = vld [vmem:[#allocation5 + $0x190] ss:$0 sm:$0xff] }
  0x57   :  { %1570 = vmatprep.subr.bf16.mxu0 %v1854_v0 }
  0x5a   :  { %1572 = vmatpush3.bf16.msra.mxu0 %v1571_v3 }
  0x5b   :  { %1573 = vmatprep.subr.bf16.mxu0 %v1854_v0 }
  0x5e   :  { %1575 = vmatpush3.bf16.msra.mxu0 %v1574_v11  ;;  %v421_v11 = vld [vmem:[#allocation5 + $0x290] sm:$0xff] }
  0x5f   :  { %1576 = vmatprep.subr.bf16.mxu0 %v1854_v0  ;;  %v1628_v13 = vpack.c.bf16 %v422_v12, %v421_v11  ;;  %v685_v11 = vld [vmem:[#allocation5 + $0x3c0] sm:$0xff]  ;;  %v686_v12 = vld [vmem:[#allocation5 + $0x3c8] sm:$0xff] }
  0x62   :  { %1578 = vmatpush3.bf16.msra.mxu0 %v1577_v14  ;;  %v500_v14 = vld [vmem:[#allocation5 + $0x2a8] sm:$0xff] }
  0x63   :  { %1579 = vmatprep.subr.bf16.mxu0 %v1854_v0 }
  0x66   :  { %1581 = vmatpush3.bf16.msra.mxu0 %v1580_v17  ;;  %v1631_v17 = vpack.c.bf16 %v501_v15, %v500_v14  ;;  %v687_v14 = vld [vmem:[#allocation5 + $0x3d0] sm:$0xff] }
  0x67   :  { %1606 = vmatprep.subr.bf16.mxu0 %v1854_v0  ;;  %v1682_v15 = vpack.c.bf16 %v687_v14, %v686_v12  ;;  %v873_v12 = vld [vmem:[#allocation5 + $0x4f0] sm:$0xff]  ;;  %v874_v14 = vld [vmem:[#allocation5 + $0x4f8] sm:$0xff] }
 0x11c   :  { %v126_v5 = vpop.f32.mrb[0].mxu0 }
 0x11d   :  { %v127_v6 = vadd.f32 %v980_v4, %v126_v5  ;;  %v1194_v7 = vpop.f32.mrb[1].mxu0  ;;  %v417_v5 = vld [vmem:[#allocation5 + $0x270] sm:$0xff] }
 0x11f   :  { %1758 = vtanh.f32 %v127_v6  ;;  %v418_v6 = vld [vmem:[#allocation5 + $0x278] sm:$0xff] }
 0x120   :  { %v1622_v7 = vpack.c.bf16 %v418_v6, %v417_v5  ;;  %v605_v5 = vld [vmem:[#allocation5 + $0x398] sm:$0xff] }
 0x129   :  { %v1759_v8 = vpop.eup %1758 }
 0x12a   :  { %1228 = vmatmul.mubr.f32.vlgmr.msra.gmra.mrb[0].mxu1 %v1759_v8  ;;  %v419_v8 = vld [vmem:[#allocation5 + $0x280] sm:$0xff] }
 0x12b   :  { %1297 = vmatprep.mubr.msk.f32.mxu1 %vm1855_vm0, %v1856_v1  ;;  %1584 = vmatpush3.bf16.msra.mxu1 %v1583_v21  ;;  %v1625_v10 = vpack.c.bf16 %v420_v9, %v419_v8  ;;  %v505_v21 = vld [vmem:[#allocation5 + $0x2d0] sm:$0xff]  ;;  %v607_v8 = vld [vmem:[#allocation5 + $0x3a8] sm:$0xff] }
 0x12c   :  { %1585 = vmatprep.subr.bf16.mxu1 %v1854_v0  ;;  %v1637_v22 = vpack.c.bf16 %v505_v21, %v504_v20  ;;  %v691_v20 = vld [vmem:[#allocation5 + $0x3f0] sm:$0xff] }
 0x12f   :  { %1587 = vmatpush3.bf16.msra.mxu1 %v1586_v23  ;;  %v506_v23 = vld [vmem:[#allocation5 + $0x2d8] sm:$0xff] }
 0x130   :  { %1588 = vmatprep.subr.bf16.mxu1 %v1854_v0  ;;  %v1640_v25 = vpack.c.bf16 %v507_v24, %v506_v23  ;;  %v693_v23 = vld [vmem:[#allocation5 + $0x400] sm:$0xff] }
 0x133   :  { %1590 = vmatpush3.bf16.msra.mxu1 %v1589_v26  ;;  %v508_v26 = vld [vmem:[#allocation5 + $0x2e8] sm:$0xff] }
 0x134   :  { %1591 = vmatprep.subr.bf16.mxu1 %v1854_v0  ;;  %v1643_v28 = vpack.c.bf16 %v509_v27, %v508_v26 }
 0x137   :  { %1593 = vmatpush3.bf16.msra.mxu1 %v1592_v29  ;;  %v983_v29 = vld [vmem:[#allocation5 + $0x218] ss:$0 sm:$0xff] }
 0x138   :  { %1594 = vmatprep.subr.bf16.mxu1 %v1854_v0 }
 0x13b   :  { %1596 = vmatpush3.bf16.msra.mxu1 %v1595_v32 }
 0x13c   :  { %1597 = vmatprep.subr.bf16.mxu1 %v1854_v0 }
 0x13f   :  { %1599 = vmatpush3.bf16.msra.mxu1 %v1598_v40  ;;  %v514_v40 = vld [vmem:[#allocation5 + $0x318] sm:$0xff] }
 0x140   :  { %1600 = vmatprep.subr.bf16.mxu1 %v1854_v0  ;;  %v1652_v42 = vpack.c.bf16 %v515_v41, %v514_v40  ;;  %v777_v40 = vld [vmem:[#allocation5 + $0x448] sm:$0xff]  ;;  %v778_v41 = vld [vmem:[#allocation5 + $0x450] sm:$0xff] }
 0x143   :  { %1602 = vmatpush3.bf16.msra.mxu1 %v1601_v43  ;;  %v592_v43 = vld [vmem:[#allocation5 + $0x330] sm:$0xff] }
 0x144   :  { %1603 = vmatprep.subr.bf16.mxu1 %v1854_v0 }
 0x147   :  { %1605 = vmatpush3.bf16.msra.mxu1 %v1604_v46  ;;  %v1655_v46 = vpack.c.bf16 %v593_v44, %v592_v43  ;;  %v779_v43 = vld [vmem:[#allocation5 + $0x458] sm:$0xff] }
 0x148   :  { %1630 = vmatprep.subr.bf16.mxu1 %v1854_v0  ;;  %v1706_v44 = vpack.c.bf16 %v779_v43, %v778_v41 }
 0x1fd   :  { %v218_v34 = vpop.f32.mrb[0].mxu1 }
 0x1fe   :  { %v219_v35 = vadd.f32 %v981_v33, %v218_v34  ;;  %v1229_v36 = vpop.f32.mrb[1].mxu1  ;;  %v510_v34 = vld [vmem:[#allocation5 + $0x2f8] sm:$0xff] }
 0x200   :  { %1760 = vtanh.f32 %v219_v35  ;;  %v511_v35 = vld [vmem:[#allocation5 + $0x300] sm:$0xff] }
 0x201   :  { %v1646_v36 = vpack.c.bf16 %v511_v35, %v510_v34  ;;  %v697_v34 = vld [vmem:[#allocation5 + $0x420] sm:$0xff] }
 0x20a   :  { %v1761_v37 = vpop.eup %1760 }
 0x20b   :  { %1263 = vmatmul.mubr.f32.vlgmr.msra.gmra.mrb[2].mxu0 %v1761_v37  ;;  %v512_v37 = vld [vmem:[#allocation5 + $0x308] sm:$0xff] }
 0x20c   :  { %1332 = vmatprep.mubr.msk.f32.mxu0 %vm1855_vm0, %v1856_v1  ;;  %1608 = vmatpush3.bf16.msra.mxu0 %v1607_v50  ;;  %v1649_v39 = vpack.c.bf16 %v513_v38, %v512_v37  ;;  %v597_v50 = vld [vmem:[#allocation5 + $0x358] sm:$0xff]  ;;  %v699_v37 = vld [vmem:[#allocation5 + $0x430] sm:$0xff] }
 0x20d   :  { %1609 = vmatprep.subr.bf16.mxu0 %v1854_v0  ;;  %v1661_v51 = vpack.c.bf16 %v597_v50, %v596_v49  ;;  %v783_v49 = vld [vmem:[#allocation5 + $0x478] sm:$0xff] }
 0x210   :  { %1611 = vmatpush3.bf16.msra.mxu0 %v1610_v52  ;;  %v598_v52 = vld [vmem:[#allocation5 + $0x360] sm:$0xff] }
 0x211   :  { %1612 = vmatprep.subr.bf16.mxu0 %v1854_v0  ;;  %v1664_v54 = vpack.c.bf16 %v599_v53, %v598_v52  ;;  %v785_v52 = vld [vmem:[#allocation5 + $0x488] sm:$0xff] }
 0x214   :  { %1614 = vmatpush3.bf16.msra.mxu0 %v1613_v55  ;;  %v600_v55 = vld [vmem:[#allocation5 + $0x370] sm:$0xff] }
 0x215   :  { %1615 = vmatprep.subr.bf16.mxu0 %v1854_v0  ;;  %v1667_v57 = vpack.c.bf16 %v601_v56, %v600_v55 }
 0x218   :  { %1617 = vmatpush3.bf16.msra.mxu0 %v1616_v58  ;;  %v984_v58 = vld [vmem:[#allocation5 + $0x2a0] ss:$0 sm:$0xff] }
 0x219   :  { %1618 = vmatprep.subr.bf16.mxu0 %v1854_v0 }
 0x21c   :  { %1620 = vmatpush3.bf16.msra.mxu0 %v1619_v61 }
 0x21d   :  { %1621 = vmatprep.subr.bf16.mxu0 %v1854_v0 }
 0x220   :  { %1623 = vmatpush3.bf16.msra.mxu0 %v1622_v7  ;;  %v606_v7 = vld [vmem:[#allocation5 + $0x3a0] sm:$0xff] }
 0x221   :  { %1624 = vmatprep.subr.bf16.mxu0 %v1854_v0  ;;  %v1676_v9 = vpack.c.bf16 %v607_v8, %v606_v7  ;;  %v869_v7 = vld [vmem:[#allocation5 + $0x4d0] sm:$0xff]  ;;  %v870_v8 = vld [vmem:[#allocation5 + $0x4d8] sm:$0xff] }
 0x224   :  { %1626 = vmatpush3.bf16.msra.mxu0 %v1625_v10  ;;  %v684_v10 = vld [vmem:[#allocation5 + $0x3b8] sm:$0xff] }
 0x225   :  { %1627 = vmatprep.subr.bf16.mxu0 %v1854_v0 }
 0x228   :  { %1629 = vmatpush3.bf16.msra.mxu0 %v1628_v13  ;;  %v1679_v13 = vpack.c.bf16 %v685_v11, %v684_v10  ;;  %v872_v11 = vld [vmem:[#allocation5 + $0x4e8] sm:$0xff] }
 0x229   :  { %1654 = vmatprep.subr.bf16.mxu0 %v1854_v0 }
 0x2de   :  { %v310_v63 = vpop.f32.mrb[2].mxu0 }
 0x2df   :  { %v311_v2 = vadd.f32 %v982_v62, %v310_v63  ;;  %v1264_v3 = vpop.f32.mrb[3].mxu0  ;;  %v602_v63 = vld [vmem:[#allocation5 + $0x380] sm:$0xff] }
 0x2e1   :  { %1762 = vtanh.f32 %v311_v2  ;;  %v603_v2 = vld [vmem:[#allocation5 + $0x388] sm:$0xff] }
 0x2e2   :  { %v1670_v3 = vpack.c.bf16 %v603_v2, %v602_v63  ;;  %v789_v63 = vld [vmem:[#allocation5 + $0x4a8] sm:$0xff] }
 0x2eb   :  { %v1763_v4 = vpop.eup %1762 }
 0x2ec   :  { %1298 = vmatmul.mubr.f32.vlgmr.msra.gmra.mrb[2].mxu1 %v1763_v4  ;;  %v604_v4 = vld [vmem:[#allocation5 + $0x390] sm:$0xff] }
 0x2ed   :  { %1367 = vmatprep.mubr.msk.f32.mxu1 %vm1855_vm0, %v1856_v1  ;;  %1632 = vmatpush3.bf16.msra.mxu1 %v1631_v17  ;;  %v1673_v6 = vpack.c.bf16 %v605_v5, %v604_v4  ;;  %v689_v17 = vld [vmem:[#allocation5 + $0x3e0] sm:$0xff]  ;;  %v791_v4 = vld [vmem:[#allocation5 + $0x4b8] sm:$0xff] }
 0x2ee   :  { %1633 = vmatprep.subr.bf16.mxu1 %v1854_v0  ;;  %v1685_v18 = vpack.c.bf16 %v689_v17, %v688_v16  ;;  %v876_v17 = vld [vmem:[#allocation5 + $0x508] sm:$0xff] }
 0x2f1   :  { %1635 = vmatpush3.bf16.msra.mxu1 %v1634_v19  ;;  %v690_v19 = vld [vmem:[#allocation5 + $0x3e8] sm:$0xff] }
 0x2f2   :  { %1636 = vmatprep.subr.bf16.mxu1 %v1854_v0  ;;  %v1688_v21 = vpack.c.bf16 %v691_v20, %v690_v19  ;;  %v987_v20 = vld [vmem:[#allocation5 + $0x438] ss:$0 sm:$0xff] }
 0x2f5   :  { %1638 = vmatpush3.bf16.msra.mxu1 %v1637_v22  ;;  %v692_v22 = vld [vmem:[#allocation5 + $0x3f8] sm:$0xff] }
 0x2f6   :  { %1639 = vmatprep.subr.bf16.mxu1 %v1854_v0  ;;  %v1691_v24 = vpack.c.bf16 %v693_v23, %v692_v22 }
 0x2f9   :  { %1641 = vmatpush3.bf16.msra.mxu1 %v1640_v25  ;;  %v985_v25 = vld [vmem:[#allocation5 + $0x328] ss:$0 sm:$0xff] }
 0x2fa   :  { %1642 = vmatprep.subr.bf16.mxu1 %v1854_v0 }
 0x2fd   :  { %1644 = vmatpush3.bf16.msra.mxu1 %v1643_v28 }
 0x2fe   :  { %1645 = vmatprep.subr.bf16.mxu1 %v1854_v0 }
 0x301   :  { %1647 = vmatpush3.bf16.msra.mxu1 %v1646_v36  ;;  %v698_v36 = vld [vmem:[#allocation5 + $0x428] sm:$0xff] }
 0x302   :  { %1648 = vmatprep.subr.bf16.mxu1 %v1854_v0  ;;  %v1700_v38 = vpack.c.bf16 %v699_v37, %v698_v36 }
 0x305   :  { %1650 = vmatpush3.bf16.msra.mxu1 %v1649_v39  ;;  %v776_v39 = vld [vmem:[#allocation5 + $0x440] sm:$0xff] }
 0x306   :  { %1651 = vmatprep.subr.bf16.mxu1 %v1854_v0 }
 0x309   :  { %1653 = vmatpush3.bf16.msra.mxu1 %v1652_v42  ;;  %v1703_v42 = vpack.c.bf16 %v777_v40, %v776_v39  ;;  %v989_v39 = vld [vmem:[#allocation5 + $0x548] ss:$0 sm:$0xff] }
 0x30a   :  { %1678 = vmatprep.subr.bf16.mxu1 %v1854_v0 }
 0x3bf   :  { %v402_v30 = vpop.f32.mrb[2].mxu1 }
 0x3c0   :  { %v403_v31 = vadd.f32 %v983_v29, %v402_v30  ;;  %v1299_v32 = vpop.f32.mrb[3].mxu1  ;;  %v694_v30 = vld [vmem:[#allocation5 + $0x408] sm:$0xff] }
 0x3c2   :  { %1764 = vtanh.f32 %v403_v31  ;;  %v695_v31 = vld [vmem:[#allocation5 + $0x410] sm:$0xff] }
 0x3c3   :  { %v1694_v32 = vpack.c.bf16 %v695_v31, %v694_v30  ;;  %v882_v31 = vld [vmem:[#allocation5 + $0x538] sm:$0xff] }
 0x3cc   :  { %v1765_v33 = vpop.eup %1764 }
 0x3cd   :  { %1333 = vmatmul.mubr.f32.vlgmr.msra.gmra.mrb[4].mxu0 %v1765_v33  ;;  %v696_v33 = vld [vmem:[#allocation5 + $0x418] sm:$0xff] }
 0x3ce   :  { %1402 = vmatprep.mubr.msk.f32.mxu0 %vm1855_vm0, %v1856_v1  ;;  %1656 = vmatpush3.bf16.msra.mxu0 %v1655_v46  ;;  %v1697_v35 = vpack.c.bf16 %v697_v34, %v696_v33  ;;  %v781_v46 = vld [vmem:[#allocation5 + $0x468] sm:$0xff]  ;;  %v988_v34 = vld [vmem:[#allocation5 + $0x4c0] ss:$0 sm:$0xff] }
 0x3cf   :  { %1657 = vmatprep.subr.bf16.mxu0 %v1854_v0  ;;  %v1709_v47 = vpack.c.bf16 %v781_v46, %v780_v45 }
 0x3d2   :  { %1659 = vmatpush3.bf16.msra.mxu0 %v1658_v48  ;;  %v782_v48 = vld [vmem:[#allocation5 + $0x470] sm:$0xff] }
 0x3d3   :  { %1660 = vmatprep.subr.bf16.mxu0 %v1854_v0  ;;  %v1712_v50 = vpack.c.bf16 %v783_v49, %v782_v48 }
 0x3d6   :  { %1662 = vmatpush3.bf16.msra.mxu0 %v1661_v51  ;;  %v784_v51 = vld [vmem:[#allocation5 + $0x480] sm:$0xff] }
 0x3d7   :  { %1663 = vmatprep.subr.bf16.mxu0 %v1854_v0  ;;  %v1715_v53 = vpack.c.bf16 %v785_v52, %v784_v51 }
 0x3da   :  { %1665 = vmatpush3.bf16.msra.mxu0 %v1664_v54  ;;  %v986_v54 = vld [vmem:[#allocation5 + $0x3b0] ss:$0 sm:$0xff] }
 0x3db   :  { %1666 = vmatprep.subr.bf16.mxu0 %v1854_v0 }
 0x3de   :  { %1668 = vmatpush3.bf16.msra.mxu0 %v1667_v57 }
 0x3df   :  { %1669 = vmatprep.subr.bf16.mxu0 %v1854_v0 }
 0x3e2   :  { %1671 = vmatpush3.bf16.msra.mxu0 %v1670_v3  ;;  %v790_v3 = vld [vmem:[#allocation5 + $0x4b0] sm:$0xff] }
 0x3e3   :  { %1672 = vmatprep.subr.bf16.mxu0 %v1854_v0  ;;  %v1724_v5 = vpack.c.bf16 %v791_v4, %v790_v3 }
 0x3e6   :  { %1674 = vmatpush3.bf16.msra.mxu0 %v1673_v6  ;;  %v868_v6 = vld [vmem:[#allocation5 + $0x4c8] sm:$0xff] }
 0x3e7   :  { %1675 = vmatprep.subr.bf16.mxu0 %v1854_v0 }
 0x3ea   :  { %1677 = vmatpush3.bf16.msra.mxu0 %v1676_v9  ;;  %v871_v9 = vld [vmem:[#allocation5 + $0x4e0] sm:$0xff] }
 0x3eb   :  { %1702 = vmatprep.subr.bf16.mxu0 %v1854_v0  ;;  %v1730_v10 = vpack.c.bf16 %v871_v9, %v870_v8 }
 0x4a0   :  { %v494_v59 = vpop.f32.mrb[4].mxu0 }
 0x4a1   :  { %v495_v60 = vadd.f32 %v984_v58, %v494_v59  ;;  %v1334_v61 = vpop.f32.mrb[5].mxu0  ;;  %v786_v59 = vld [vmem:[#allocation5 + $0x490] sm:$0xff] }
 0x4a3   :  { %1766 = vtanh.f32 %v495_v60  ;;  %v787_v60 = vld [vmem:[#allocation5 + $0x498] sm:$0xff] }
 0x4a4   :  { %v1718_v61 = vpack.c.bf16 %v787_v60, %v786_v59 }
 0x4ad   :  { %v1767_v62 = vpop.eup %1766 }
 0x4ae   :  { %499 = vst [vmem:[#allocation7] sm:$0xff] %v1767_v62  ;;  %1368 = vmatmul.mubr.f32.vlgmr.msra.gmra.mrb[4].mxu1 %v1767_v62  ;;  %v788_v62 = vld [vmem:[#allocation5 + $0x4a0] sm:$0xff] }
 0x4af   :  { %1437 = vmatprep.mubr.msk.f32.mxu1 %vm1855_vm0, %v1856_v1  ;;  %1680 = vmatpush3.bf16.msra.mxu1 %v1679_v13  ;;  %v1721_v2 = vpack.c.bf16 %v789_v63, %v788_v62  ;;  %v1733_v13 = vpack.c.bf16 %v873_v12, %v872_v11 }
 0x4b0   :  { %1681 = vmatprep.subr.bf16.mxu1 %v1854_v0 }
 0x4b3   :  { %1683 = vmatpush3.bf16.msra.mxu1 %v1682_v15  ;;  %v875_v15 = vld [vmem:[#allocation5 + $0x500] sm:$0xff] }
 0x4b4   :  { %1684 = vmatprep.subr.bf16.mxu1 %v1854_v0  ;;  %v1736_v16 = vpack.c.bf16 %v875_v15, %v874_v14 }
 0x4b7   :  { %1686 = vmatpush3.bf16.msra.mxu1 %v1685_v18  ;;  %v877_v18 = vld [vmem:[#allocation5 + $0x510] sm:$0xff] }
 0x4b8   :  { %1687 = vmatprep.subr.bf16.mxu1 %v1854_v0  ;;  %v1739_v19 = vpack.c.bf16 %v877_v18, %v876_v17 }
 0x4bb   :  { %1689 = vmatpush3.bf16.msra.mxu1 %v1688_v21 }
 0x4bc   :  { %1690 = vmatprep.subr.bf16.mxu1 %v1854_v0 }
 0x4bf   :  { %1692 = vmatpush3.bf16.msra.mxu1 %v1691_v24 }
 0x4c0   :  { %1693 = vmatprep.subr.bf16.mxu1 %v1854_v0 }
 0x4c3   :  { %1695 = vmatpush3.bf16.msra.mxu1 %v1694_v32  ;;  %v883_v32 = vld [vmem:[#allocation5 + $0x540] sm:$0xff] }
 0x4c4   :  { %1696 = vmatprep.subr.bf16.mxu1 %v1854_v0  ;;  %v1748_v33 = vpack.c.bf16 %v883_v32, %v882_v31 }
 0x4c7   :  { %1698 = vmatpush3.bf16.msra.mxu1 %v1697_v35 }
 0x4c8   :  { %1699 = vmatprep.subr.bf16.mxu1 %v1854_v0 }
 0x4cb   :  { %1701 = vmatpush3.bf16.msra.mxu1 %v1700_v38 }
 0x4cc   :  { %1726 = vmatprep.subr.bf16.mxu1 %v1854_v0 }
 0x581   :  { %v587_v26 = vpop.f32.mrb[4].mxu1 }
 0x582   :  { %v588_v27 = vadd.f32 %v985_v25, %v587_v26  ;;  %v1369_v28 = vpop.f32.mrb[5].mxu1  ;;  %v878_v25 = vld [vmem:[#allocation5 + $0x518] sm:$0xff]  ;;  %v879_v26 = vld [vmem:[#allocation5 + $0x520] sm:$0xff] }
 0x583   :  { %v880_v28 = vld [vmem:[#allocation5 + $0x528] sm:$0xff] }
 0x584   :  { %1768 = vtanh.f32 %v588_v27  ;;  %v1742_v27 = vpack.c.bf16 %v879_v26, %v878_v25 }
 0x58e   :  { %v1769_v29 = vpop.eup %1768 }
 0x58f   :  { %1403 = vmatmul.mubr.f32.vlgmr.msra.gmra.mrb[6].mxu0 %v1769_v29  ;;  %v881_v29 = vld [vmem:[#allocation5 + $0x530] sm:$0xff] }
 0x590   :  { %1472 = vmatprep.mubr.msk.f32.mxu0 %vm1855_vm0, %v1856_v1  ;;  %1704 = vmatpush3.bf16.msra.mxu0 %v1703_v42  ;;  %v1745_v30 = vpack.c.bf16 %v881_v29, %v880_v28 }
 0x591   :  { %1705 = vmatprep.subr.bf16.mxu0 %v1854_v0 }
 0x594   :  { %1707 = vmatpush3.bf16.msra.mxu0 %v1706_v44 }
 0x595   :  { %1708 = vmatprep.subr.bf16.mxu0 %v1854_v0 }
 0x598   :  { %1710 = vmatpush3.bf16.msra.mxu0 %v1709_v47 }
 0x599   :  { %1711 = vmatprep.subr.bf16.mxu0 %v1854_v0 }
 0x59c   :  { %1713 = vmatpush3.bf16.msra.mxu0 %v1712_v50 }
 0x59d   :  { %1714 = vmatprep.subr.bf16.mxu0 %v1854_v0 }
 0x5a0   :  { %1716 = vmatpush3.bf16.msra.mxu0 %v1715_v53 }
 0x5a1   :  { %1717 = vmatprep.subr.bf16.mxu0 %v1854_v0 }
 0x5a4   :  { %1719 = vmatpush3.bf16.msra.mxu0 %v1718_v61 }
 0x5a5   :  { %1720 = vmatprep.subr.bf16.mxu0 %v1854_v0 }
 0x5a8   :  { %1722 = vmatpush3.bf16.msra.mxu0 %v1721_v2 }
 0x5a9   :  { %1723 = vmatprep.subr.bf16.mxu0 %v1854_v0 }
 0x5ac   :  { %1725 = vmatpush3.bf16.msra.mxu0 %v1724_v5 }
 0x662   :  { %v679_v55 = vpop.f32.mrb[6].mxu0 }
 0x663   :  { %v680_v56 = vadd.f32 %v986_v54, %v679_v55  ;;  %v1404_v57 = vpop.f32.mrb[7].mxu0 }
 0x665   :  { %1770 = vtanh.f32 %v680_v56 }
 0x66f   :  { %v1771_v58 = vpop.eup %1770 }
 0x670   :  { %1438 = vmatmul.mubr.f32.vlgmr.msra.gmra.mrb[6].mxu1 %v1771_v58 }
 0x671   :  { %1507 = vmatprep.mubr.msk.f32.mxu1 %vm1855_vm0, %v1856_v1  ;;  %v1727_v1 = vpack.c.bf16 %v869_v7, %v868_v6 }
 0x673   :  { %1728 = vmatpush3.bf16.msra.mxu1 %v1727_v1 }
 0x674   :  { %1729 = vmatprep.subr.bf16.mxu1 %v1854_v0 }
 0x677   :  { %1731 = vmatpush3.bf16.msra.mxu1 %v1730_v10 }
 0x678   :  { %1732 = vmatprep.subr.bf16.mxu1 %v1854_v0 }
 0x67b   :  { %1734 = vmatpush3.bf16.msra.mxu1 %v1733_v13 }
 0x67c   :  { %1735 = vmatprep.subr.bf16.mxu1 %v1854_v0 }
 0x67f   :  { %1737 = vmatpush3.bf16.msra.mxu1 %v1736_v16 }
 0x680   :  { %1738 = vmatprep.subr.bf16.mxu1 %v1854_v0 }
 0x683   :  { %1740 = vmatpush3.bf16.msra.mxu1 %v1739_v19 }
 0x684   :  { %1741 = vmatprep.subr.bf16.mxu1 %v1854_v0 }
 0x687   :  { %1743 = vmatpush3.bf16.msra.mxu1 %v1742_v27 }
 0x688   :  { %1744 = vmatprep.subr.bf16.mxu1 %v1854_v0 }
 0x68b   :  { %1746 = vmatpush3.bf16.msra.mxu1 %v1745_v30 }
 0x68c   :  { %1747 = vmatprep.subr.bf16.mxu1 %v1854_v0 }
 0x68f   :  { %1749 = vmatpush3.bf16.msra.mxu1 %v1748_v33 }
 0x743   :  { %v771_v21 = vpop.f32.mrb[6].mxu1 }
 0x744   :  { %v772_v22 = vadd.f32 %v987_v20, %v771_v21  ;;  %v1439_v23 = vpop.f32.mrb[7].mxu1 }
 0x746   :  { %1772 = vtanh.f32 %v772_v22 }
 0x750   :  { %v1773_v24 = vpop.eup %1772 }
 0x751   :  { %1473 = vmatmul.mubr.f32.vlgmr.msra.gmra.mrb[8].mxu0 %v1773_v24 }
 0x824   :  { %v863_v35 = vpop.f32.mrb[8].mxu0 }
 0x825   :  { %v864_v36 = vadd.f32 %v988_v34, %v863_v35  ;;  %v1474_v37 = vpop.f32.mrb[9].mxu0 }
 0x827   :  { %1774 = vtanh.f32 %v864_v36 }
 0x831   :  { %v1775_v38 = vpop.eup %1774 }
 0x832   :  { %1508 = vmatmul.mubr.f32.vlgmr.msra.gmra.mrb[8].mxu1 %v1775_v38 }
 0x905   :  { %v955_v40 = vpop.f32.mrb[8].mxu1 }
 0x906   :  { %v956_v41 = vadd.f32 %v989_v39, %v955_v40  ;;  %v1509_v42 = vpop.f32.mrb[9].mxu1 }
 0x908   :  { %1776 = vtanh.f32 %v956_v41 }
 0x912   :  { %v1777_v43 = vpop.eup %1776 }
 0x913   :  { %961 = vst [vmem:[#allocation7 + $0x8] sm:$0xff] %v1777_v43 }
 0x914   :  { %1833 = shalt.err (!%p1830_p6)
}
 0x915   :  { %s1834_s10 = scalar_lea.hbm %s2024_s2, 256 }
 0x916   :  { %p1835_p7 = scmp.ne.s32.totalorder %s2024_s2, %s1834_s10  ;;  %p1838_p8 = scmp.lt.u32.totalorder %s1834_s10, %s2024_s2 }
 0x918   :  { %p1840_p9 = pnand %p1838_p8, %p1835_p7 }
 0x91a   :  { %1843 = shalt.err (!%p1840_p9)
}
 0x91b   :  { %973 = dma.vmem_to_hbm [thread:$0]  %s968_s6, 256, %s2024_s2, [#allocation4], %s1852_s0, %s1852_s0, %s1853_s3  }
 0x91c   :  { %1848 = dma.done.wait [#allocation4], 256  }
 0x91d   :  { %1849 = vsyncadd [#allocation4], 4294967040 }
 0x91e   :  { %977 = vsyncpa [#allocation3], 1 }
 0x91f   :  { %978 = vsyncpa [#allocation6], 1 }
 0x920   :  { %979 = vsyncpa [#allocation4], 1 }

</bundles_post_ra>
